<compile_context>
chip_gen: v6e
topology: v6e:2x2x1
jax: 0.10.0
libtpu: 0.0.40
codegen_flags: <defaults>
</compile_context>

<pallas_src>
import functools

import jax
import jax.numpy as jnp
from jax.experimental import pallas as pl
from jax.experimental.pallas import tpu as pltpu


_VMEM_LIMIT = 32 * 1024 * 1024  # safe on v5e/v6e (128 MiB) and v7x (64 MiB physical)


def _pick_block(n, target):
    """Largest block <= target that divides n and is a multiple of 8; else full n."""
    if n <= target:
        return n
    b = (target // 8) * 8
    while b >= 8:
        if n % b == 0:
            return b
        b -= 8
    return n


def _fused_vmem_estimate(N, C, itemsize):
    """Rough VMEM footprint (bytes) of the fused path for one grid step."""
    weights = 2 * (C * 3 * C + C * C + 4 * C) * itemsize      # double-buffered weights+bias
    io = 2 * 5 * N * C * itemsize                             # x, q, k, v, out (double-buffered)
    tmps = (4 * N * C + N * C + 2 * N * N) * 4                # f32 qkv, acc scratch, scores
    return weights + io + tmps


# ------------------------ fused kernel: qkv + attention + proj -------------------------

def _fused_attention_kernel(x_ref, wqkv_ref, bqkv_ref, wproj_ref, bproj_ref,
                            q_ref, k_ref, v_ref, out_ref, acc_sc,
                            *, num_heads, scale, approx_recip):
    x = x_ref[0]                                              # (N, C), native dtype
    C = x.shape[-1]
    hd = C // num_heads
    io_dt = x.dtype

    # Fused qkv projection: operands stay in the native (bf16-friendly) dtype, f32 acc.
    qkv = jnp.dot(x, wqkv_ref[...], preferred_element_type=jnp.float32)
    qkv = qkv + bqkv_ref[0]                                   # (N, 3C) f32

    q = qkv[:, 0 * C:1 * C]
    k = qkv[:, 1 * C:2 * C]
    v = qkv[:, 2 * C:3 * C]

    # The module returns q/k/v in the I/O dtype; write them straight out.
    q_ref[0] = q.astype(q_ref.dtype)
    k_ref[0] = k.astype(k_ref.dtype)
    v_ref[0] = v.astype(v_ref.dtype)

    # Attention operands in the I/O dtype for the MXU; scale folded into q (O(N*C)).
    qs = (q * scale).astype(io_dt)
    kc = k.astype(io_dt)
    vc = v.astype(io_dt)

    # Contract the LAST dim of both operands: q @ k^T without a materialized transpose.
    nt_dims = (((1,), (1,)), ((), ()))
    for h in range(num_heads):
        sl = slice(h * hd, (h + 1) * hd)
        s = jax.lax.dot_general(qs[:, sl], kc[:, sl], nt_dims,
                                preferred_element_type=jnp.float32)      # (N, N) f32
        m = jnp.max(s, axis=-1, keepdims=True)
        p = jnp.exp(s - m)
        l = jnp.sum(p, axis=-1, keepdims=True)
        pv = jnp.dot(p.astype(io_dt), vc[:, sl],
                     preferred_element_type=jnp.float32)                 # (N, hd) f32
        inv_l = pl.reciprocal(l, approx=approx_recip)
        acc_sc[:, sl] = pv * inv_l                            # head output -> (N, C) slab

    # Output projection: one lane-dense (N, C) @ (C, C) MXU matmul.
    attn = acc_sc[...].astype(wproj_ref.dtype)
    y = jnp.dot(attn, wproj_ref[...], preferred_element_type=jnp.float32)
    out_ref[0] = (y + bproj_ref[0]).astype(out_ref.dtype)


def _attention_ds_fused(x, w_qkv, b_qkv2, w_proj, b_proj2, *, num_heads, scale):
    B, N, C = x.shape
    kernel = functools.partial(
        _fused_attention_kernel,
        num_heads=num_heads, scale=scale,
        approx_recip=bool(x.dtype == jnp.bfloat16))

    seq_spec = pl.BlockSpec((1, N, C), lambda b: (b, 0, 0))
    q, k, v, out = pl.pallas_call(
        kernel,
        out_shape=tuple(jax.ShapeDtypeStruct((B, N, C), x.dtype) for _ in range(4)),
        grid_spec=pltpu.PrefetchScalarGridSpec(
            num_scalar_prefetch=0,
            grid=(B,),
            in_specs=[
                seq_spec,                                     # x
                pl.BlockSpec((C, 3 * C), lambda b: (0, 0)),   # w_qkv
                pl.BlockSpec((1, 3 * C), lambda b: (0, 0)),   # b_qkv
                pl.BlockSpec((C, C), lambda b: (0, 0)),       # w_proj
                pl.BlockSpec((1, C), lambda b: (0, 0)),       # b_proj
            ],
            out_specs=[seq_spec, seq_spec, seq_spec, seq_spec],
            scratch_shapes=[pltpu.VMEM((N, C), jnp.float32)],  # head-output accumulator
        ),
        compiler_params=pltpu.CompilerParams(
            dimension_semantics=("parallel",),
            vmem_limit_bytes=_VMEM_LIMIT),
    )(x, w_qkv, b_qkv2, w_proj, b_proj2)
    return out, (q, k, v)


# -------------------- fallback path (long sequences): two tiled kernels ----------------

def _qkv_proj_kernel(x_ref, wqkv_ref, bqkv_ref, q_ref, k_ref, v_ref):
    x = x_ref[0]                                              # (TM, C), native dtype
    qkv = jnp.dot(x, wqkv_ref[...], preferred_element_type=jnp.float32)
    qkv = qkv + bqkv_ref[0]                                   # (TM, 3C) f32
    C = x.shape[-1]
    q_ref[0] = qkv[:, 0 * C:1 * C].astype(q_ref.dtype)
    k_ref[0] = qkv[:, 1 * C:2 * C].astype(k_ref.dtype)
    v_ref[0] = qkv[:, 2 * C:3 * C].astype(v_ref.dtype)


def _flash_attn_proj_kernel(q_ref, k_ref, v_ref, wproj_ref, bproj_ref, out_ref,
                            m_sc, l_sc, acc_sc, *, num_heads, scale, approx_recip):
    ki = pl.program_id(2)

    @pl.when(ki == 0)
    def _init():
        m_sc[...] = jnp.full_like(m_sc, -jnp.inf)
        l_sc[...] = jnp.zeros_like(l_sc)
        acc_sc[...] = jnp.zeros_like(acc_sc)

    q = q_ref[0]                                              # (TQ, C), native dtype
    k = k_ref[0]                                              # (TK, C)
    v = v_ref[0]                                              # (TK, C)
    C = q.shape[-1]
    hd = C // num_heads
    nt_dims = (((1,), (1,)), ((), ()))

    for h in range(num_heads):
        sl = slice(h * hd, (h + 1) * hd)
        qh = q[:, sl] * scale                                 # scale folded into q
        kh = k[:, sl]
        vh = v[:, sl]

        s = jax.lax.dot_general(qh, kh, nt_dims,
                                preferred_element_type=jnp.float32)      # (TQ, TK) f32

        m_prev = m_sc[:, h:h + 1]                             # (TQ, 1)
        m_new = jnp.maximum(m_prev, jnp.max(s, axis=-1, keepdims=True))
        alpha = jnp.exp(m_prev - m_new)
        p = jnp.exp(s - m_new)                                # (TQ, TK) f32
        l_sc[:, h:h + 1] = alpha * l_sc[:, h:h + 1] + jnp.sum(p, axis=-1, keepdims=True)
        pv = jnp.dot(p.astype(vh.dtype), vh, preferred_element_type=jnp.float32)
        acc_sc[:, sl] = alpha * acc_sc[:, sl] + pv
        m_sc[:, h:h + 1] = m_new

    @pl.when(ki == pl.num_programs(2) - 1)
    def _finalize():
        inv_l = pl.reciprocal(l_sc[...], approx=approx_recip)            # (TQ, H)
        for h in range(num_heads):
            sl = slice(h * hd, (h + 1) * hd)
            acc_sc[:, sl] = acc_sc[:, sl] * inv_l[:, h:h + 1]
        attn = acc_sc[...].astype(wproj_ref.dtype)                       # (TQ, C)
        y = jnp.dot(attn, wproj_ref[...], preferred_element_type=jnp.float32)
        y = y + bproj_ref[0]
        out_ref[0] = y.astype(out_ref.dtype)


def _attention_ds_tiled(x, w_qkv, b_qkv2, w_proj, b_proj2, *, num_heads, scale,
                        block_q, block_kv):
    B, N, C = x.shape
    tq = _pick_block(N, block_q)
    tk = _pick_block(N, block_kv)
    nq = N // tq
    nk = N // tk

    # --- kernel 1: qkv projection over (batch, row-blocks) ---
    row_spec = pl.BlockSpec((1, tq, C), lambda b, i: (b, i, 0))
    q, k, v = pl.pallas_call(
        _qkv_proj_kernel,
        out_shape=tuple(jax.ShapeDtypeStruct((B, N, C), x.dtype) for _ in range(3)),
        grid_spec=pltpu.PrefetchScalarGridSpec(
            num_scalar_prefetch=0,
            grid=(B, nq),
            in_specs=[
                row_spec,                                         # x
                pl.BlockSpec((C, 3 * C), lambda b, i: (0, 0)),    # w_qkv
                pl.BlockSpec((1, 3 * C), lambda b, i: (0, 0)),    # b_qkv
            ],
            out_specs=[row_spec, row_spec, row_spec],
        ),
        compiler_params=pltpu.CompilerParams(
            dimension_semantics=("parallel", "parallel"),
            vmem_limit_bytes=_VMEM_LIMIT),
    )(x, w_qkv, b_qkv2)

    # --- kernel 2: flash attention + output projection over (batch, q-blocks, kv-blocks) ---
    kernel = functools.partial(
        _flash_attn_proj_kernel,
        num_heads=num_heads, scale=scale,
        approx_recip=bool(x.dtype == jnp.bfloat16))
    q_spec = pl.BlockSpec((1, tq, C), lambda b, i, j: (b, i, 0))
    kv_spec = pl.BlockSpec((1, tk, C), lambda b, i, j: (b, j, 0))

    out = pl.pallas_call(
        kernel,
        out_shape=jax.ShapeDtypeStruct((B, N, C), x.dtype),
        grid_spec=pltpu.PrefetchScalarGridSpec(
            num_scalar_prefetch=0,
            grid=(B, nq, nk),
            in_specs=[
                q_spec,                                           # q
                kv_spec,                                          # k
                kv_spec,                                          # v
                pl.BlockSpec((C, C), lambda b, i, j: (0, 0)),     # w_proj
                pl.BlockSpec((1, C), lambda b, i, j: (0, 0)),     # b_proj
            ],
            out_specs=q_spec,
            scratch_shapes=[
                pltpu.VMEM((tq, num_heads), jnp.float32),         # running max (per head)
                pltpu.VMEM((tq, num_heads), jnp.float32),         # running sum (per head)
                pltpu.VMEM((tq, C), jnp.float32),                 # output accumulator
            ],
        ),
        compiler_params=pltpu.CompilerParams(
            dimension_semantics=("parallel", "parallel", "arbitrary"),
            vmem_limit_bytes=_VMEM_LIMIT),
    )(q, k, v, w_proj, b_proj2)

    return out, (q, k, v)


# ----------------------------------- public wrapper ------------------------------------

def attention_ds(x, w_qkv, b_qkv, w_proj, b_proj, *, num_heads,
                 block_q=128, block_kv=128, force_tiled=False):
    """Pallas implementation of AttentionDS.forward.

    x:      (B, N, C)
    w_qkv:  (C, 3C)   b_qkv: (3C,)
    w_proj: (C, C)    b_proj: (C,)
    Returns (out, (q, k, v)) with out/q/k/v all (B, N, C).
    """
    B, N, C = x.shape
    assert C % num_heads == 0, "dim should be divisible by num_heads"
    hd = C // num_heads
    scale = hd ** (-0.5)

    b_qkv2 = b_qkv.reshape(1, 3 * C)
    b_proj2 = b_proj.reshape(1, C)

    itemsize = jnp.dtype(x.dtype).itemsize
    use_fused = (not force_tiled) and \
        _fused_vmem_estimate(N, C, itemsize) <= int(0.75 * _VMEM_LIMIT)

    if use_fused:
        return _attention_ds_fused(x, w_qkv, b_qkv2, w_proj, b_proj2,
                                   num_heads=num_heads, scale=scale)
    return _attention_ds_tiled(x, w_qkv, b_qkv2, w_proj, b_proj2,
                               num_heads=num_heads, scale=scale,
                               block_q=block_q, block_kv=block_kv)


# ----------------------------------- reference -----------------------------------

def attention_ds_reference(x, w_qkv, b_qkv, w_proj, b_proj, *, num_heads):
    """Pure-JAX reference mirroring the PyTorch forward exactly."""
    B, N, C = x.shape
    hd = C // num_heads
    scale = hd ** (-0.5)
    qkv = x @ w_qkv + b_qkv                                               # (B, N, 3C)
    qkv_h = qkv.reshape(B, N, 3, num_heads, hd).transpose(2, 0, 3, 1, 4)  # (3, B, H, N, hd)
    q, k, v = qkv_h[0], qkv_h[1], qkv_h[2]
    qkv_out = qkv.reshape(B, N, 3, C).transpose(2, 0, 1, 3)               # (3, B, N, C)
    attn = jnp.einsum("bhnd,bhmd->bhnm", q, k) * scale
    attn = jax.nn.softmax(attn, axis=-1)
    out = jnp.einsum("bhnm,bhmd->bhnd", attn, v)                          # (B, H, N, hd)
    out = out.transpose(0, 2, 1, 3).reshape(B, N, C)
    out = out @ w_proj + b_proj
    return out, (qkv_out[0], qkv_out[1], qkv_out[2])


if __name__ == "__main__":
    # Small shapes consistent with the module: dim divisible by num_heads.
    B, N, C = 2, 8, 32
    NUM_HEADS = 4

    key = jax.random.PRNGKey(0)
    kx, kw1, kw2, kb2 = jax.random.split(key, 4)

    x = jax.random.normal(kx, (B, N, C), dtype=jnp.float32)
    # qkv_bias=False in the module default -> zero bias (identical semantics).
    w_qkv = jax.random.normal(kw1, (C, 3 * C), dtype=jnp.float32) * 0.05
    b_qkv = jnp.zeros((3 * C,), dtype=jnp.float32)
    w_proj = jax.random.normal(kw2, (C, C), dtype=jnp.float32) * 0.05
    b_proj = jax.random.normal(kb2, (C,), dtype=jnp.float32) * 0.05

    ref_out, (rq, rk, rv) = attention_ds_reference(
        x, w_qkv, b_qkv, w_proj, b_proj, num_heads=NUM_HEADS)

    # Default (fused) path.
    out, (q, k, v) = attention_ds(x, w_qkv, b_qkv, w_proj, b_proj, num_heads=NUM_HEADS)
    jax.block_until_ready(out)
    jax.block_until_ready(q)
    jax.block_until_ready(k)
    jax.block_until_ready(v)
    assert jnp.allclose(q, rq, atol=1e-4, rtol=1e-4)
    assert jnp.allclose(k, rk, atol=1e-4, rtol=1e-4)
    assert jnp.allclose(v, rv, atol=1e-4, rtol=1e-4)
    assert jnp.allclose(out, ref_out, atol=1e-4, rtol=1e-4)

    # Fallback (tiled flash) path — keep it validated too.
    out_t, (qt, kt, vt) = attention_ds(x, w_qkv, b_qkv, w_proj, b_proj,
                                       num_heads=NUM_HEADS, force_tiled=True)
    jax.block_until_ready(out_t)
    assert jnp.allclose(qt, rq, atol=1e-4, rtol=1e-4)
    assert jnp.allclose(kt, rk, atol=1e-4, rtol=1e-4)
    assert jnp.allclose(vt, rv, atol=1e-4, rtol=1e-4)
    assert jnp.allclose(out_t, ref_out, atol=1e-4, rtol=1e-4)

    print("KERNEL_OK")
</pallas_src>

<mosaic_0001>
module attributes {stable_mosaic.version = 11 : i64} {
  func.func @_fused_attention_kernel(%arg0: i32, %arg1: memref<1x8x32xf32, #tpu.memory_space<vmem>>, %arg2: memref<32x96xf32, #tpu.memory_space<vmem>>, %arg3: memref<1x96xf32, #tpu.memory_space<vmem>>, %arg4: memref<32x32xf32, #tpu.memory_space<vmem>>, %arg5: memref<1x32xf32, #tpu.memory_space<vmem>>, %arg6: memref<1x8x32xf32, #tpu.memory_space<vmem>>, %arg7: memref<1x8x32xf32, #tpu.memory_space<vmem>>, %arg8: memref<1x8x32xf32, #tpu.memory_space<vmem>>, %arg9: memref<1x8x32xf32, #tpu.memory_space<vmem>>, %arg10: memref<8x32xf32, #tpu.memory_space<vmem>>) attributes {dimension_semantics = [#tpu.dimension_semantics<parallel>], iteration_bounds = array<i64: 2>, scalar_prefetch = 0 : i64, scratch_operands = 1 : i64, tpu.core_type = #tpu.core_type<tc>, window_params = [{transform_indices = @transform_0, window_bounds = array<i64: 1, 8, 32>}, {pipeline_mode = #tpu.pipeline_mode<synchronous>, transform_indices = @transform_1, window_bounds = array<i64: 32, 96>}, {pipeline_mode = #tpu.pipeline_mode<synchronous>, transform_indices = @transform_2, window_bounds = array<i64: 1, 96>}, {pipeline_mode = #tpu.pipeline_mode<synchronous>, transform_indices = @transform_3, window_bounds = array<i64: 32, 32>}, {pipeline_mode = #tpu.pipeline_mode<synchronous>, transform_indices = @transform_4, window_bounds = array<i64: 1, 32>}, {transform_indices = @transform_5, window_bounds = array<i64: 1, 8, 32>}, {transform_indices = @transform_6, window_bounds = array<i64: 1, 8, 32>}, {transform_indices = @transform_7, window_bounds = array<i64: 1, 8, 32>}, {transform_indices = @transform_8, window_bounds = array<i64: 1, 8, 32>}]} {
    %c0 = arith.constant 0 : index
    %c0_0 = arith.constant 0 : index
    %c0_1 = arith.constant 0 : index
    %0 = vector.load %arg1[%c0, %c0_0, %c0_1] : memref<1x8x32xf32, #tpu.memory_space<vmem>>, vector<1x8x32xf32>
    %1 = vector.shape_cast %0 : vector<1x8x32xf32> to vector<8x32xf32>
    %c0_2 = arith.constant 0 : index
    %c0_3 = arith.constant 0 : index
    %2 = vector.load %arg2[%c0_2, %c0_3] : memref<32x96xf32, #tpu.memory_space<vmem>>, vector<32x96xf32>
    %cst = arith.constant dense<0.000000e+00> : vector<8x96xf32>
    %3 = tpu.matmul %1, %2, %cst {dimension_numbers = #tpu.dot_dimension_numbers<[1], [0], [0], [1], [0, 0, 1, 1], [], []>} : vector<8x32xf32>, vector<32x96xf32>, vector<8x96xf32> -> vector<8x96xf32>
    %c0_4 = arith.constant 0 : index
    %c0_5 = arith.constant 0 : index
    %4 = vector.load %arg3[%c0_4, %c0_5] : memref<1x96xf32, #tpu.memory_space<vmem>>, vector<1x96xf32>
    %5 = vector.shape_cast %4 : vector<1x96xf32> to vector<96xf32>
    %6 = vector.shape_cast %5 : vector<96xf32> to vector<1x96xf32>
    %7 = vector.broadcast %6 : vector<1x96xf32> to vector<8x96xf32>
    %8 = arith.addf %3, %7 : vector<8x96xf32>
    %9 = vector.extract_strided_slice %8 {offsets = [0, 0], sizes = [8, 32], strides = [1, 1]} : vector<8x96xf32> to vector<8x32xf32>
    %10 = vector.extract_strided_slice %8 {offsets = [0, 32], sizes = [8, 32], strides = [1, 1]} : vector<8x96xf32> to vector<8x32xf32>
    %11 = vector.extract_strided_slice %8 {offsets = [0, 64], sizes = [8, 32], strides = [1, 1]} : vector<8x96xf32> to vector<8x32xf32>
    %c0_6 = arith.constant 0 : index
    %c0_7 = arith.constant 0 : index
    %c0_8 = arith.constant 0 : index
    %12 = vector.load %arg6[%c0_6, %c0_7, %c0_8] : memref<1x8x32xf32, #tpu.memory_space<vmem>>, vector<1x8x32xf32>
    %13 = vector.shape_cast %12 : vector<1x8x32xf32> to vector<8x32xf32>
    %14 = vector.shape_cast %9 : vector<8x32xf32> to vector<1x8x32xf32>
    tpu.vector_store %arg6[%c0_6, %c0_7, %c0_8], %14 {strides = array<i32>} : memref<1x8x32xf32, #tpu.memory_space<vmem>>, vector<1x8x32xf32>,
    %c0_9 = arith.constant 0 : index
    %c0_10 = arith.constant 0 : index
    %c0_11 = arith.constant 0 : index
    %15 = vector.load %arg7[%c0_9, %c0_10, %c0_11] : memref<1x8x32xf32, #tpu.memory_space<vmem>>, vector<1x8x32xf32>
    %16 = vector.shape_cast %15 : vector<1x8x32xf32> to vector<8x32xf32>
    %17 = vector.shape_cast %10 : vector<8x32xf32> to vector<1x8x32xf32>
    tpu.vector_store %arg7[%c0_9, %c0_10, %c0_11], %17 {strides = array<i32>} : memref<1x8x32xf32, #tpu.memory_space<vmem>>, vector<1x8x32xf32>,
    %c0_12 = arith.constant 0 : index
    %c0_13 = arith.constant 0 : index
    %c0_14 = arith.constant 0 : index
    %18 = vector.load %arg8[%c0_12, %c0_13, %c0_14] : memref<1x8x32xf32, #tpu.memory_space<vmem>>, vector<1x8x32xf32>
    %19 = vector.shape_cast %18 : vector<1x8x32xf32> to vector<8x32xf32>
    %20 = vector.shape_cast %11 : vector<8x32xf32> to vector<1x8x32xf32>
    tpu.vector_store %arg8[%c0_12, %c0_13, %c0_14], %20 {strides = array<i32>} : memref<1x8x32xf32, #tpu.memory_space<vmem>>, vector<1x8x32xf32>,
    %cst_15 = arith.constant 0.353553385 : f32
    %21 = vector.broadcast %cst_15 : f32 to vector<8x32xf32>
    %22 = arith.mulf %9, %21 : vector<8x32xf32>
    %23 = vector.extract_strided_slice %22 {offsets = [0, 0], sizes = [8, 8], strides = [1, 1]} : vector<8x32xf32> to vector<8x8xf32>
    %24 = vector.extract_strided_slice %10 {offsets = [0, 0], sizes = [8, 8], strides = [1, 1]} : vector<8x32xf32> to vector<8x8xf32>
    %cst_16 = arith.constant dense<0.000000e+00> : vector<8x8xf32>
    %25 = tpu.matmul %23, %24, %cst_16 {dimension_numbers = #tpu.dot_dimension_numbers<[1], [1], [0], [0], [0, 0, 1, 0], [], []>} : vector<8x8xf32>, vector<8x8xf32>, vector<8x8xf32> -> vector<8x8xf32>
    %cst_17 = arith.constant dense<0xFF800000> : vector<8xf32>
    %26 = vector.multi_reduction <maximumf>, %25, %cst_17 [1] : vector<8x8xf32> to vector<8xf32>
    %27 = vector.shape_cast %26 : vector<8xf32> to vector<8x1xf32>
    %28 = vector.broadcast %27 : vector<8x1xf32> to vector<8x8xf32>
    %29 = arith.subf %25, %28 : vector<8x8xf32>
    %30 = math.exp %29 : vector<8x8xf32>
    %cst_18 = arith.constant dense<0.000000e+00> : vector<8xf32>
    %31 = vector.multi_reduction <add>, %30, %cst_18 [1] : vector<8x8xf32> to vector<8xf32>
    %32 = vector.shape_cast %31 : vector<8xf32> to vector<8x1xf32>
    %33 = vector.extract_strided_slice %11 {offsets = [0, 0], sizes = [8, 8], strides = [1, 1]} : vector<8x32xf32> to vector<8x8xf32>
    %cst_19 = arith.constant dense<0.000000e+00> : vector<8x8xf32>
    %34 = tpu.matmul %30, %33, %cst_19 {dimension_numbers = #tpu.dot_dimension_numbers<[1], [0], [0], [1], [0, 0, 1, 1], [], []>} : vector<8x8xf32>, vector<8x8xf32>, vector<8x8xf32> -> vector<8x8xf32>
    %35 = tpu.reciprocal %32 : vector<8x1xf32> -> vector<8x1xf32>
    %36 = vector.broadcast %35 : vector<8x1xf32> to vector<8x8xf32>
    %37 = arith.mulf %34, %36 : vector<8x8xf32>
    %c0_20 = arith.constant 0 : index
    %c0_21 = arith.constant 0 : index
    %38 = vector.load %arg10[%c0_20, %c0_21] : memref<8x32xf32, #tpu.memory_space<vmem>>, vector<8x8xf32>
    tpu.vector_store %arg10[%c0_20, %c0_21], %37 {strides = array<i32>} : memref<8x32xf32, #tpu.memory_space<vmem>>, vector<8x8xf32>,
    %39 = vector.extract_strided_slice %22 {offsets = [0, 8], sizes = [8, 8], strides = [1, 1]} : vector<8x32xf32> to vector<8x8xf32>
    %40 = vector.extract_strided_slice %10 {offsets = [0, 8], sizes = [8, 8], strides = [1, 1]} : vector<8x32xf32> to vector<8x8xf32>
    %cst_22 = arith.constant dense<0.000000e+00> : vector<8x8xf32>
    %41 = tpu.matmul %39, %40, %cst_22 {dimension_numbers = #tpu.dot_dimension_numbers<[1], [1], [0], [0], [0, 0, 1, 0], [], []>} : vector<8x8xf32>, vector<8x8xf32>, vector<8x8xf32> -> vector<8x8xf32>
    %cst_23 = arith.constant dense<0xFF800000> : vector<8xf32>
    %42 = vector.multi_reduction <maximumf>, %41, %cst_23 [1] : vector<8x8xf32> to vector<8xf32>
    %43 = vector.shape_cast %42 : vector<8xf32> to vector<8x1xf32>
    %44 = vector.broadcast %43 : vector<8x1xf32> to vector<8x8xf32>
    %45 = arith.subf %41, %44 : vector<8x8xf32>
    %46 = math.exp %45 : vector<8x8xf32>
    %cst_24 = arith.constant dense<0.000000e+00> : vector<8xf32>
    %47 = vector.multi_reduction <add>, %46, %cst_24 [1] : vector<8x8xf32> to vector<8xf32>
    %48 = vector.shape_cast %47 : vector<8xf32> to vector<8x1xf32>
    %49 = vector.extract_strided_slice %11 {offsets = [0, 8], sizes = [8, 8], strides = [1, 1]} : vector<8x32xf32> to vector<8x8xf32>
    %cst_25 = arith.constant dense<0.000000e+00> : vector<8x8xf32>
    %50 = tpu.matmul %46, %49, %cst_25 {dimension_numbers = #tpu.dot_dimension_numbers<[1], [0], [0], [1], [0, 0, 1, 1], [], []>} : vector<8x8xf32>, vector<8x8xf32>, vector<8x8xf32> -> vector<8x8xf32>
    %51 = tpu.reciprocal %48 : vector<8x1xf32> -> vector<8x1xf32>
    %52 = vector.broadcast %51 : vector<8x1xf32> to vector<8x8xf32>
    %53 = arith.mulf %50, %52 : vector<8x8xf32>
    %c0_26 = arith.constant 0 : index
    %c8 = arith.constant 8 : index
    %54 = vector.load %arg10[%c0_26, %c8] : memref<8x32xf32, #tpu.memory_space<vmem>>, vector<8x8xf32>
    tpu.vector_store %arg10[%c0_26, %c8], %53 {strides = array<i32>} : memref<8x32xf32, #tpu.memory_space<vmem>>, vector<8x8xf32>,
    %55 = vector.extract_strided_slice %22 {offsets = [0, 16], sizes = [8, 8], strides = [1, 1]} : vector<8x32xf32> to vector<8x8xf32>
    %56 = vector.extract_strided_slice %10 {offsets = [0, 16], sizes = [8, 8], strides = [1, 1]} : vector<8x32xf32> to vector<8x8xf32>
    %cst_27 = arith.constant dense<0.000000e+00> : vector<8x8xf32>
    %57 = tpu.matmul %55, %56, %cst_27 {dimension_numbers = #tpu.dot_dimension_numbers<[1], [1], [0], [0], [0, 0, 1, 0], [], []>} : vector<8x8xf32>, vector<8x8xf32>, vector<8x8xf32> -> vector<8x8xf32>
    %cst_28 = arith.constant dense<0xFF800000> : vector<8xf32>
    %58 = vector.multi_reduction <maximumf>, %57, %cst_28 [1] : vector<8x8xf32> to vector<8xf32>
    %59 = vector.shape_cast %58 : vector<8xf32> to vector<8x1xf32>
    %60 = vector.broadcast %59 : vector<8x1xf32> to vector<8x8xf32>
    %61 = arith.subf %57, %60 : vector<8x8xf32>
    %62 = math.exp %61 : vector<8x8xf32>
    %cst_29 = arith.constant dense<0.000000e+00> : vector<8xf32>
    %63 = vector.multi_reduction <add>, %62, %cst_29 [1] : vector<8x8xf32> to vector<8xf32>
    %64 = vector.shape_cast %63 : vector<8xf32> to vector<8x1xf32>
    %65 = vector.extract_strided_slice %11 {offsets = [0, 16], sizes = [8, 8], strides = [1, 1]} : vector<8x32xf32> to vector<8x8xf32>
    %cst_30 = arith.constant dense<0.000000e+00> : vector<8x8xf32>
    %66 = tpu.matmul %62, %65, %cst_30 {dimension_numbers = #tpu.dot_dimension_numbers<[1], [0], [0], [1], [0, 0, 1, 1], [], []>} : vector<8x8xf32>, vector<8x8xf32>, vector<8x8xf32> -> vector<8x8xf32>
    %67 = tpu.reciprocal %64 : vector<8x1xf32> -> vector<8x1xf32>
    %68 = vector.broadcast %67 : vector<8x1xf32> to vector<8x8xf32>
    %69 = arith.mulf %66, %68 : vector<8x8xf32>
    %c0_31 = arith.constant 0 : index
    %c16 = arith.constant 16 : index
    %70 = vector.load %arg10[%c0_31, %c16] : memref<8x32xf32, #tpu.memory_space<vmem>>, vector<8x8xf32>
    tpu.vector_store %arg10[%c0_31, %c16], %69 {strides = array<i32>} : memref<8x32xf32, #tpu.memory_space<vmem>>, vector<8x8xf32>,
    %71 = vector.extract_strided_slice %22 {offsets = [0, 24], sizes = [8, 8], strides = [1, 1]} : vector<8x32xf32> to vector<8x8xf32>
    %72 = vector.extract_strided_slice %10 {offsets = [0, 24], sizes = [8, 8], strides = [1, 1]} : vector<8x32xf32> to vector<8x8xf32>
    %cst_32 = arith.constant dense<0.000000e+00> : vector<8x8xf32>
    %73 = tpu.matmul %71, %72, %cst_32 {dimension_numbers = #tpu.dot_dimension_numbers<[1], [1], [0], [0], [0, 0, 1, 0], [], []>} : vector<8x8xf32>, vector<8x8xf32>, vector<8x8xf32> -> vector<8x8xf32>
    %cst_33 = arith.constant dense<0xFF800000> : vector<8xf32>
    %74 = vector.multi_reduction <maximumf>, %73, %cst_33 [1] : vector<8x8xf32> to vector<8xf32>
    %75 = vector.shape_cast %74 : vector<8xf32> to vector<8x1xf32>
    %76 = vector.broadcast %75 : vector<8x1xf32> to vector<8x8xf32>
    %77 = arith.subf %73, %76 : vector<8x8xf32>
    %78 = math.exp %77 : vector<8x8xf32>
    %cst_34 = arith.constant dense<0.000000e+00> : vector<8xf32>
    %79 = vector.multi_reduction <add>, %78, %cst_34 [1] : vector<8x8xf32> to vector<8xf32>
    %80 = vector.shape_cast %79 : vector<8xf32> to vector<8x1xf32>
    %81 = vector.extract_strided_slice %11 {offsets = [0, 24], sizes = [8, 8], strides = [1, 1]} : vector<8x32xf32> to vector<8x8xf32>
    %cst_35 = arith.constant dense<0.000000e+00> : vector<8x8xf32>
    %82 = tpu.matmul %78, %81, %cst_35 {dimension_numbers = #tpu.dot_dimension_numbers<[1], [0], [0], [1], [0, 0, 1, 1], [], []>} : vector<8x8xf32>, vector<8x8xf32>, vector<8x8xf32> -> vector<8x8xf32>
    %83 = tpu.reciprocal %80 : vector<8x1xf32> -> vector<8x1xf32>
    %84 = vector.broadcast %83 : vector<8x1xf32> to vector<8x8xf32>
    %85 = arith.mulf %82, %84 : vector<8x8xf32>
    %c0_36 = arith.constant 0 : index
    %c24 = arith.constant 24 : index
    %86 = vector.load %arg10[%c0_36, %c24] : memref<8x32xf32, #tpu.memory_space<vmem>>, vector<8x8xf32>
    tpu.vector_store %arg10[%c0_36, %c24], %85 {strides = array<i32>} : memref<8x32xf32, #tpu.memory_space<vmem>>, vector<8x8xf32>,
    %c0_37 = arith.constant 0 : index
    %c0_38 = arith.constant 0 : index
    %87 = vector.load %arg10[%c0_37, %c0_38] : memref<8x32xf32, #tpu.memory_space<vmem>>, vector<8x32xf32>
    %c0_39 = arith.constant 0 : index
    %c0_40 = arith.constant 0 : index
    %88 = vector.load %arg4[%c0_39, %c0_40] : memref<32x32xf32, #tpu.memory_space<vmem>>, vector<32x32xf32>
    %cst_41 = arith.constant dense<0.000000e+00> : vector<8x32xf32>
    %89 = tpu.matmul %87, %88, %cst_41 {dimension_numbers = #tpu.dot_dimension_numbers<[1], [0], [0], [1], [0, 0, 1, 1], [], []>} : vector<8x32xf32>, vector<32x32xf32>, vector<8x32xf32> -> vector<8x32xf32>
    %c0_42 = arith.constant 0 : index
    %c0_43 = arith.constant 0 : index
    %90 = vector.load %arg5[%c0_42, %c0_43] : memref<1x32xf32, #tpu.memory_space<vmem>>, vector<1x32xf32>
    %91 = vector.shape_cast %90 : vector<1x32xf32> to vector<32xf32>
    %92 = vector.shape_cast %91 : vector<32xf32> to vector<1x32xf32>
    %93 = vector.broadcast %92 : vector<1x32xf32> to vector<8x32xf32>
    %94 = arith.addf %89, %93 : vector<8x32xf32>
    %c0_44 = arith.constant 0 : index
    %c0_45 = arith.constant 0 : index
    %c0_46 = arith.constant 0 : index
    %95 = vector.load %arg9[%c0_44, %c0_45, %c0_46] : memref<1x8x32xf32, #tpu.memory_space<vmem>>, vector<1x8x32xf32>
    %96 = vector.shape_cast %95 : vector<1x8x32xf32> to vector<8x32xf32>
    %97 = vector.shape_cast %94 : vector<8x32xf32> to vector<1x8x32xf32>
    tpu.vector_store %arg9[%c0_44, %c0_45, %c0_46], %97 {strides = array<i32>} : memref<1x8x32xf32, #tpu.memory_space<vmem>>, vector<1x8x32xf32>,
    return
  }
  func.func @transform_0(%arg0: i32) -> (i32, i32, i32) {
    %c0_i32 = arith.constant 0 : i32
    %c0_i32_0 = arith.constant 0 : i32
    %c0_i32_1 = arith.constant 0 : i32
    return %arg0, %c0_i32, %c0_i32_0 : i32, i32, i32
  }
  func.func @transform_1(%arg0: i32) -> (i32, i32) {
    %c0_i32 = arith.constant 0 : i32
    %c0_i32_0 = arith.constant 0 : i32
    %c0_i32_1 = arith.constant 0 : i32
    return %c0_i32, %c0_i32_0 : i32, i32
  }
  func.func @transform_2(%arg0: i32) -> (i32, i32) {
    %c0_i32 = arith.constant 0 : i32
    %c0_i32_0 = arith.constant 0 : i32
    %c0_i32_1 = arith.constant 0 : i32
    return %c0_i32, %c0_i32_0 : i32, i32
  }
  func.func @transform_3(%arg0: i32) -> (i32, i32) {
    %c0_i32 = arith.constant 0 : i32
    %c0_i32_0 = arith.constant 0 : i32
    %c0_i32_1 = arith.constant 0 : i32
    return %c0_i32, %c0_i32_0 : i32, i32
  }
  func.func @transform_4(%arg0: i32) -> (i32, i32) {
    %c0_i32 = arith.constant 0 : i32
    %c0_i32_0 = arith.constant 0 : i32
    %c0_i32_1 = arith.constant 0 : i32
    return %c0_i32, %c0_i32_0 : i32, i32
  }
  func.func @transform_5(%arg0: i32) -> (i32, i32, i32) {
    %c0_i32 = arith.constant 0 : i32
    %c0_i32_0 = arith.constant 0 : i32
    %c0_i32_1 = arith.constant 0 : i32
    return %arg0, %c0_i32, %c0_i32_0 : i32, i32, i32
  }
  func.func @transform_6(%arg0: i32) -> (i32, i32, i32) {
    %c0_i32 = arith.constant 0 : i32
    %c0_i32_0 = arith.constant 0 : i32
    %c0_i32_1 = arith.constant 0 : i32
    return %arg0, %c0_i32, %c0_i32_0 : i32, i32, i32
  }
  func.func @transform_7(%arg0: i32) -> (i32, i32, i32) {
    %c0_i32 = arith.constant 0 : i32
    %c0_i32_0 = arith.constant 0 : i32
    %c0_i32_1 = arith.constant 0 : i32
    return %arg0, %c0_i32, %c0_i32_0 : i32, i32, i32
  }
  func.func @transform_8(%arg0: i32) -> (i32, i32, i32) {
    %c0_i32 = arith.constant 0 : i32
    %c0_i32_0 = arith.constant 0 : i32
    %c0_i32_1 = arith.constant 0 : i32
    return %arg0, %c0_i32, %c0_i32_0 : i32, i32, i32
  }
}

</mosaic_0001>

<bundles_post_ra>
// kernel: tpu_custom_call.1
= control target key start
LH: loop header
LB: loop body
LE: loop exit
PB: predicated region body
PF: predicated region fallthrough
CT: control target
= control target key end

     0   :  { %s2395_s0 = inlined_call_operand.hbm [shape: f32[2,8,32], index: 0, kind: input, shape index: {}]   ;;  %s2396_s1 = inlined_call_operand.hbm [shape: f32[32,96], index: 1, kind: input, shape index: {}]   ;;  %s2397_s2 = inlined_call_operand.vmem [shape: f32[1,96], index: 2, kind: input, shape index: {}]   ;;  %s2398_s3 = inlined_call_operand.hbm [shape: f32[32,32], index: 3, kind: input, shape index: {}]   ;;  %s2399_s4 = inlined_call_operand.vmem [shape: f32[1,32], index: 4, kind: input, shape index: {}]   ;;  %s2400_s5 = inlined_call_operand.hbm [shape: f32[2,8,32], index: 5, kind: output, shape index: {0}]   ;;  %s2401_s6 = inlined_call_operand.hbm [shape: f32[2,8,32], index: 6, kind: output, shape index: {1}]   ;;  %s2402_s7 = inlined_call_operand.hbm [shape: f32[2,8,32], index: 7, kind: output, shape index: {2}]   ;;  %s2403_s8 = inlined_call_operand.hbm [shape: f32[2,8,32], index: 8, kind: output, shape index: {3}]  }
   0x1   :  { %2410 = sst [smem:[#allocation21_spill]] %s2395_s0 }
   0x2   :  { %2411 = sst [smem:[#allocation22_spill]] %s2396_s1 }
   0x3   :  { %2412 = sst [smem:[#allocation23_spill]] %s2398_s3 }
   0x4   :  { %14 = vsyncpa [#allocation4], 0 }
   0x5   :  { %16 = vsyncpa [#allocation4 + $0x1], 0 }
   0x6   :  { %17 = vsyncpa [#allocation7], 0 }
   0x7   :  { %18 = vsyncpa [#allocation5], 0 }
   0x8   :  { %20 = vsyncpa [#allocation5 + $0x1], 0 }
   0x9   :  { %21 = vsyncpa [#allocation11], 0 }
   0xa   :  { %23 = vsyncpa [#allocation11 + $0x1], 0 }
   0xb   :  { %24 = vsyncpa [#allocation14], 0 }
   0xc   :  { %26 = vsyncpa [#allocation14 + $0x1], 0  ;;  %s2036_s27 = smov 0   ;;  %s2038_s28 = smov 0  }
   0xd   :  { %s2040_s29 = smov 0   ;;  %s2042_s30 = smov 0  }
   0xe LB: > { %s2057_s9 = sadd.s32 4294967295, %s1964_s30   ;;  %s2405_s10 = sadd.s32 4294967294, %s1964_s30   ;;  %s1964_s30 = sphi %s2042_s30, %s2437_s30   ;;  %s1960_s29 = sphi %s2040_s29, %s2436_s29   ;;  %s1956_s28 = sphi %s2038_s28, %s2435_s28   ;;  %s1952_s27 = sphi %s2036_s27, %s2434_s27  }
   0xf   : > { %p52_p0 = scmp.ne.s32.totalorder %s1956_s28, %s1952_s27  ;;  %p2404_p1 = scmp.eq.s32.totalorder %s2057_s9, 0 }
  0x10   : > { %p166_p3 = scmp.eq.s32.totalorder %s2405_s10, 1  ;;  %p1486_p5 = scmp.ge.s32.totalorder %s1964_s30, 1 }
  0x11   : > { %p2068_p4 = por %p2404_p1, %p52_p0  ;;  %p251_p7 = scmp.lt.s32.totalorder %s1964_s30, 3 }
  0x12   : > { %p2073_p6 = por %p166_p3, %p52_p0  ;;  %s1966_s14 = smov [#allocation6]  }
  0x13   : > { %s2413_s11 = scalar_select %p2068_p4, 1, 0 }
  0x14   : > { %s2414_s12 = scalar_select %p2073_p6, 1, 0 }
  0x15   : > { %p2078_p8 = pnand %p1486_p5, %p251_p7  ;;  %s263_s15 = sshll.u32 %s1966_s14, 4  ;;  %s264_s15 = int_to_ptr.vmem [resolvable:$true] %s263_s15 }
  0x16   : > { %s1967_s17 = smov [#allocation8]   ;;  %s1741_s19 = scalar_lea.vmem %s264_s15, 512 }
  0x17   : > { %s2415_s13 = scalar_select %p2078_p8, 1, 0 }
  0x18   : > { %p1632_p9 = pneg %p2078_p8  ;;  %s279_s18 = sshll.u32 %s1967_s17, 4  ;;  %s280_s18 = int_to_ptr.vmem [resolvable:$true] %s279_s18 }
  0x19   : > { %p1742_p13 = scmp.ne.s32.totalorder %s264_s15, %s1741_s19  ;;  %p1749_p5 = scmp.lt.s32.totalorder %s264_s15, %s264_s15 }
  0x1a   : > { %p2087_p11 = pnand %p1632_p9, %p2404_p1  ;;  %p1750_p7 = scmp.lt.s32.totalorder %s1741_s19, %s1741_s19 }
  0x1c   : > { %p1732_p12 = pneg %p2087_p11  ;;  %p1751_p10 = por %p1750_p7, %p1749_p5 }
  0x1e   : > { %p1744_p0 = pnand %p1742_p13, %p1732_p12 }
  0x20   : > { %p1745_p3 = pneg %p1744_p0 }
  0x22   : > { %p1752_p9 = pnand %p1751_p10, %p1745_p3 }
  0x24   : > { %1755 = shalt.err (!%p1752_p9)
}
  0x25   : > { %s1968_s20 = smov 128   ;;  %s1969_s21 = smov 8  }
  0x26   : > { %s2417_s1 = sld [smem:[#allocation22_spill]]  ;;  %s1767_s24 = scalar_lea.vmem %s280_s18, 512 }
  0x27   : > { %p1768_p1 = scmp.ne.s32.totalorder %s280_s18, %s1767_s24  ;;  %p1775_p2 = scmp.lt.s32.totalorder %s280_s18, %s280_s18 }
  0x28   : > { %p1776_p6 = scmp.lt.s32.totalorder %s1767_s24, %s1767_s24 }
  0x29   : > { %p1770_p13 = pnand %p1768_p1, %p1732_p12 }
  0x2a   : > { %p1777_p5 = por %p1776_p6, %p1775_p2 }
  0x2b   : > { %p1771_p0 = pneg %p1770_p13 }
  0x2c   : > { %1635 = dma.hbm_to_vmem [thread:$0]  (!%p2087_p11), %s2417_s1, 512, %s264_s15, [#allocation7], %s1968_s20, %s1968_s20, %s1969_s21  }
  0x2d   : > { %p1778_p10 = pnand %p1777_p5, %p1771_p0 }
  0x2f   : > { %1781 = shalt.err (!%p1778_p10)
}
  0x30   : > { %s2418_s3 = sld [smem:[#allocation23_spill]]  ;;  %s2110_s14 = sadd.s32 1, %s1964_s30  }
  0x31   : > { %s39_s15 = sadd.s32 1, %s1960_s29  ;;  %s36_s16 = ssub.s32 %s1964_s30, %s2110_s14 }
  0x32   : > { %p46_p1 = scmp.ne.s32.totalorder %s1960_s29, %s1956_s28  ;;  %p37_p2 = scmp.eq.s32.totalorder %s36_s16, 0 }
  0x33   : > { %p47_p6 = scmp.eq.s32.totalorder %s1964_s30, 0  ;;  %p2419_p12 = scmp.eq.s32.totalorder %s2057_s9, 1 }
  0x34   : > { %p1658_p7 = scmp.lt.s32.totalorder %s1964_s30, 2  ;;  %s296_s22 = sand.u32 1, %s1960_s29  }
  0x35   : > { %p2120_p3 = por %p2419_p12, %p46_p1  ;;  %p48_p9 = por %p47_p6, %p46_p1 }
  0x36   : > { %1638 = dma.hbm_to_vmem [thread:$0]  (!%p2087_p11), %s2418_s3, 512, %s280_s18, [#allocation7], %s1968_s20, %s1968_s20, %s1969_s21  }
  0x37   : > { %s2420_s17 = scalar_select %p2120_p3, 1, 0 }
  0x38   : > { %s2126_s19 = scalar_select %p37_p2, %s1960_s29, %s39_s15  }
  0x39   : > { %s1490_s23 = sshll.u32 %s296_s22, 3  ;;  %s1491_s18 = sshll.u32 %s1964_s30, 7 }
  0x3a   : > { %2421 = sst [smem:[#allocation20_spill]] %s2126_s19  ;;  %s300_s25 = scalar_lea.vmem [#allocation3], %s1490_s23 }
  0x3b   : > { %s2422_s0 = sld [smem:[#allocation21_spill]]  ;;  %s307_s26 = sshll.u32 %s300_s25, 4  ;;  %s308_s26 = int_to_ptr.vmem [resolvable:$true] %s307_s26 }
  0x3c   : > { %p2135_p11 = pnand %p1658_p7, %p48_p9  ;;  %s297_s15 = scalar_lea.sflag [#allocation4], %s296_s22 }
  0x3e   : > { %p1784_p0 = pneg %p2135_p11 }
  0x41   : > { %s2133_s24 = scalar_lea.hbm %s2422_s0, %s1491_s18  ;;  %s1787_s21 = scalar_lea.hbm %s2422_s0, 256 }
  0x42   : > { %s1782_s10 = scalar_lea.hbm %s2133_s24, 128  ;;  %p1788_p1 = scmp.lt.s32.totalorder %s2133_s24, %s2422_s0 }
  0x43   : > { %p1783_p13 = scmp.ne.s32.totalorder %s2133_s24, %s1782_s10  ;;  %p1789_p2 = scmp.lt.s32.totalorder %s1787_s21, %s1782_s10 }
  0x45   : > { %p1785_p5 = pnand %p1784_p0, %p1783_p13  ;;  %p1790_p6 = por %p1789_p2, %p1788_p1 }
  0x47   : > { %p1786_p10 = pneg %p1785_p5 }
  0x49   : > { %p1791_p12 = pnand %p1790_p6, %p1786_p10 }
  0x4b   : > { %1794 = shalt.err (!%p1791_p12)
}
  0x4c   : > { %s1795_s25 = scalar_lea.vmem %s308_s26, 128  ;;  %s1970_s22 = smov [#allocation3]  }
  0x4d   : > { %p1796_p7 = scmp.ne.s32.totalorder %s308_s26, %s1795_s25  ;;  %s1800_s3 = sshll.u32 %s1970_s22, 4  ;;  %s1801_s3 = int_to_ptr.vmem [resolvable:$false] %s1800_s3 }
  0x4e   : > { %s1802_s19 = scalar_lea.vmem %s1801_s3, 256  ;;  %p1803_p13 = scmp.lt.s32.totalorder %s308_s26, %s1801_s3 }
  0x4f   : > { %p1798_p9 = pnand %p1796_p7, %p1784_p0  ;;  %p1804_p5 = scmp.lt.s32.totalorder %s1802_s19, %s1795_s25 }
  0x51   : > { %p1799_p3 = pneg %p1798_p9  ;;  %p1805_p4 = por %p1804_p5, %p1803_p13 }
  0x53   : > { %p1806_p8 = pnand %p1805_p4, %p1799_p3 }
  0x55   : > { %1809 = shalt.err (!%p1806_p8)
}
  0x56   : > { %1642 = dma.hbm_to_vmem [thread:$0]  (!%p2135_p11), %s2133_s24, 128, %s308_s26, %s297_s15  }
  0x57   : > { %p2424_p10 = scmp.ne.s32.totalorder %s2415_s13, 0 }
  0x58   : > { %s2156_s1 = sand.u32 (!%p2424_p10), 1, %s1956_s28   ;;  %p2425_p4 = scmp.ne.s32.totalorder (!%p2424_p10), %s2413_s11, 0 }
  0x59   : > { %316 = sbr.rel (%p2424_p10) target bundleno = 1659 (0x67b), region = 40  ;;  %s2159_s10 = sshll.u32 (!%p2424_p10), %s2156_s1, 3 }
  0x5a   : > { %s319_s3 = scalar_lea.sflag (!%p2424_p10), [#allocation4], %s2156_s1  ;;  %s322_s19 = scalar_lea.vmem (!%p2424_p10), [#allocation3], %s2159_s10 }
  0x5e   : > { %1931 = dma.done.wait (%p2425_p4), %s319_s3, 128  }
  0x5f   : > { %1933 = vsyncadd (%p2425_p4), %s319_s3, 4294967168  ;;  %p2426_p8 = scmp.eq.s32.totalorder %s2057_s9, 0 }
  0x61   : > { %1935 = dma.done.wait (%p2426_p8), [#allocation7], 1024   ;;  %p2427_p3 = pmov %p2426_p8 }
  0x62   : > { %v1971_v0 = vmov 0.0   ;;  %vm1972_vm0 = vmmov 0   ;;  %v382_v1 = vld [vmem:[#allocation6 + $0x18] sm:$0xff]  ;;  %v381_v2 = vld [vmem:[#allocation6 + $0x10] sm:$0xff]  ;;  %v380_v3 = vld [vmem:[#allocation6 + $0x8] sm:$0xff]  ;;  %vm390_vm1 = vcmask 261120  }
  0x63   : > { %1937 = vsyncadd (%p2427_p3), [#allocation7], 4294966272  ;;  %1552 = vmatprep.subr.mxu0 %v1971_v0  ;;  %1560 = vmatprep.mubr.msk.f32.mxu0 %vm1972_vm0, %v1971_v0  ;;  %v379_v4 = vld [vmem:[#allocation6] sm:$0xff]  ;;  %v378_v5 = vld [vmem:[%s322_s19] sm:$0xff]  ;;  %s1973_s24 = smov 64   ;;  %s1974_s26 = smov 96  }
  0x64   : > { %1563 = vmatprep.subr.mxu1 %v1971_v0  ;;  %1565 = vmatprep.mubr.msk.f32.mxu1 %vm1972_vm0, %v1971_v0  ;;  %v1500_v6 = vld [vmem:[%s2397_s2] ss:$0 sm:$0xff]  ;;  %s2409_s16 = scalar_lea.vmem [#allocation9], %s2159_s10  ;;  %s1975_s15 = smov 88   ;;  %vm475_vm2 = vcmask 64512   ;;  %v1153_v62 = vld [vmem:[#allocation8 + $0x18] sm:$0xff] }
  0x65   : > { %1553 = vmatpush3.msra.mxu0 %v382_v1  ;;  %s1976_s18 = smov 120   ;;  %s1977_s20 = smov 80   ;;  %v1152_v63 = vld [vmem:[#allocation8 + $0x10] sm:$0xff]  ;;  %vm805_vm3 = vcmask 130112   ;;  %vm976_vm4 = vcmask 195712   ;;  %vm1147_vm5 = vcmask 261312  }
  0x66   : > { %1554 = vmatprep.subr.mxu0 %v1971_v0  ;;  %s1978_s21 = smov 112   ;;  %s1979_s23 = smov 72  }
  0x67   : > { %1555 = vmatpush3.msra.mxu0 %v381_v2  ;;  %s1980_s25 = smov 104   ;;  %s370_s22 = scalar_lea.vmem [#allocation12], %s2159_s10 }
  0x68   : > { %1556 = vmatprep.subr.mxu0 %v1971_v0  ;;  %s363_s3 = scalar_lea.vmem [#allocation10], %s2159_s10  ;;  %s1981_s19 = smov 56  }
  0x69   : > { %1557 = vmatpush3.msra.mxu0 %v380_v3  ;;  %s1982_s11 = smov 40   ;;  %s1983_s13 = smov 48   ;;  %v1151_v3 = vld [vmem:[#allocation8 + $0x8] sm:$0xff] }
  0x6a   : > { %1558 = vmatprep.subr.mxu0 %v1971_v0  ;;  %p2428_p0 = scmp.ne.s32.totalorder %s2420_s17, 0 }
  0x6b   : > { %1559 = vmatpush3.msra.mxu0 %v379_v4 }
  0x6c   : > { %1561 = vmatmul.mubr.msk.f32.vlgmr.msra.gmra.mxu0 %vm390_vm1, %v378_v5  ;;  %1583 = vmatprep.subr.mxu0 %v1971_v0 }
  0x6d   : > { %1585 = vmatprep.mubr.msk.f32.mxu0 %vm1972_vm0, %v1971_v0 }
 0x12c   : > { %v460_v7 = vpop.f32.mrf.mxu0 }
 0x12d   : > { %v2187_v8 = vadd.f32 %v1500_v6, %v460_v7  ;;  %v1150_v6 = vld [vmem:[#allocation8] sm:$0xff] }
 0x12e   : > { %v1562_v9 = vpop.f32.mrf.mxu0 }
 0x12f   : > { %470 = vrot.lane.b32.xlu1 %v2187_v8, %s1973_s24  ;;  %466 = vrot.lane.b32.xlu0 %v2187_v8, %s1974_s26  ;;  %464 = vst.msk [vmem:[%s2409_s16] sm:$0xff] %vm390_vm1, %v2187_v8  ;;  %v474_v10 = vmul.f32 0.35355338, %v2187_v8  ;;  %s1984_s24 = smov 8   ;;  %s1985_s26 = smov 16  }
 0x133   : > { %638 = vrot.lane.b32.xlu1 %v2187_v8, %s1975_s15  ;;  %s1986_s15 = smov 24  }
 0x137   : > { %636 = vrot.lane.b32.xlu1 %v474_v10, %s1976_s18  ;;  %s2259_s18 = sshll.u32 %s370_s22, 4  ;;  %s2307_s18 = int_to_ptr.vmem [resolvable:$true] %s2259_s18 }
 0x13b   : > { %809 = vrot.lane.b32.xlu1 %v2187_v8, %s1977_s20  ;;  %s1240_s20 = sand.u32 1, %s2057_s9  }
 0x13f   : > { %807 = vrot.lane.b32.xlu1 %v474_v10, %s1978_s21  ;;  %s2263_s21 = sshll.u32 %s2057_s9, 7  ;;  %s1987_s9 = smov [#allocation10]  }
 0x143   : > { %980 = vrot.lane.b32.xlu1 %v2187_v8, %s1979_s23  ;;  %s1814_s23 = sshll.u32 %s1987_s9, 4  ;;  %s1815_s23 = int_to_ptr.vmem [resolvable:$false] %s1814_s23 }
 0x147   : > { %978 = vrot.lane.b32.xlu1 %v474_v10, %s1980_s25  ;;  %s1816_s25 = scalar_lea.vmem %s1815_s23, 256 }
 0x1a1   : > { %v471_v11 = vpop.permute.xlu1 %470  ;;  %v467_v12 = vpop.permute.xlu0 %466 }
 0x1a2   : > { %473 = vst.msk [vmem:[%s370_s22] sm:$0xff] %vm390_vm1, %v471_v11  ;;  %469 = vst.msk [vmem:[%s363_s3] sm:$0xff] %vm390_vm1, %v467_v12  ;;  %1564 = vmatpush3.xpose.msk.msra.mxu1 %vm475_vm2, %v467_v12  ;;  %s2279_s22 = scalar_lea.sflag [#allocation11], %s1240_s20 }
 0x1a3   : > { %1568 = vmatprep.subr.mxu1 %v1971_v0 }
 0x1a5   : > { %v639_v13 = vpop.permute.xlu1 %638  ;;  %1566 = vmatmul.mubr.msk.f32.vlgmr.msra.gmra.mxu1 %vm475_vm2, %v474_v10 }
 0x1a6   : > { %1569 = vmatpush3.msra.mxu1 %v471_v11  ;;  %1570 = vmatprep.mubr.msk.f32.mxu1 %vm1972_vm0, %v1971_v0 }
 0x1a7   : > { %1573 = vmatprep.subr.mxu1 %v1971_v0 }
 0x1a9   : > { %v637_v14 = vpop.permute.xlu1 %636 }
 0x1ad   : > { %v810_v15 = vpop.permute.xlu1 %809 }
 0x1ae   : > { %1584 = vmatpush3.xpose.msk.msra.mxu0 %vm475_vm2, %v810_v15 }
 0x1af   : > { %1593 = vmatprep.subr.mxu0 %v1971_v0 }
 0x1b1   : > { %v808_v16 = vpop.permute.xlu1 %807 }
 0x1b2   : > { %1586 = vmatmul.mubr.msk.f32.vlgmr.msra.gmra.mxu0 %vm475_vm2, %v808_v16 }
 0x1b3   : > { %1595 = vmatprep.mubr.msk.f32.mxu0 %vm1972_vm0, %v1971_v0 }
 0x1b5   : > { %v981_v17 = vpop.permute.xlu1 %980 }
 0x1b6   : > { %1594 = vmatpush3.xpose.msk.msra.mxu0 %vm475_vm2, %v981_v17 }
 0x1b7   : > { %1603 = vmatprep.subr.mxu0 %v1971_v0 }
 0x1b9   : > { %v979_v18 = vpop.permute.xlu1 %978 }
 0x1ba   : > { %1596 = vmatmul.mubr.msk.f32.vlgmr.msra.gmra.mxu0 %vm475_vm2, %v979_v18 }
 0x1bb   : > { %1611 = vmatprep.mubr.msk.f32.mxu0 %vm1972_vm0, %v1971_v0  ;;  %1604 = vmatpush3.msra.mxu0 %v1153_v62 }
 0x1bc   : > { %1605 = vmatprep.subr.mxu0 %v1971_v0 }
 0x1bd   : > { %1606 = vmatpush3.msra.mxu0 %v1152_v63 }
 0x1be   : > { %1607 = vmatprep.subr.mxu0 %v1971_v0 }
 0x1bf   : > { %1608 = vmatpush3.msra.mxu0 %v1151_v3 }
 0x1c0   : > { %1609 = vmatprep.subr.mxu0 %v1971_v0 }
 0x1c1   : > { %1610 = vmatpush3.msra.mxu0 %v1150_v6 }
 0x265   : > { %v547_v19 = vpop.f32.mrf.mxu1 }
 0x266   : > { %v551_v20 = vsel %vm475_vm2, %v547_v19, -inf }
 0x267   : > { %552 = vmax.xlane.f32.xlu0 %v551_v20  ;;  %v1567_v21 = vpop.f32.mrf.mxu1 }
 0x272   : > { %v881_v22 = vpop.f32.mrf.mxu0 }
 0x273   : > { %v885_v26 = vsel %vm475_vm2, %v881_v22, -inf }
 0x274   : > { %v1587_v23 = vpop.f32.mrf.mxu0 }
 0x27a   : > { %v1052_v24 = vpop.f32.mrf.mxu0 }
 0x27b   : > { %v1056_v27 = vsel %vm475_vm2, %v1052_v24, -inf }
 0x27c   : > { %v1597_v25 = vpop.f32.mrf.mxu0 }
 0x27d   : > { %723 = vrot.lane.b32.xlu0 %v2187_v8, %s1981_s19  ;;  %s2269_s19 = scalar_lea.hbm %s2401_s6, %s2263_s21 }
 0x29c   : > { %886 = vmax.xlane.f32.xlu0 %v885_v26 }
 0x2a0   : > { %1057 = vmax.xlane.f32.xlu0 %v1056_v27 }
 0x2b6   : > { %1065 = vrot.lane.b32.xlu0 %v2187_v8, %s1982_s11  ;;  %s1277_s11 = sshll.u32 %s363_s3, 4  ;;  %s1278_s11 = int_to_ptr.vmem [resolvable:$true] %s1277_s11 }
 0x2b7   : > { %p1817_p6 = scmp.lt.s32.totalorder %s1278_s11, %s1815_s23 }
 0x2f0   : > { %v553_v28 = vpop.xlane.xlu0 %552 }
 0x2f1   : > { %v554_v29 = vsub.f32 %v547_v19, %v553_v28 }
 0x2f3   : > { %v555_v30 = vmul.f32 1.442695, %v554_v29 }
 0x2f4   : > { %v724_v32 = vpop.permute.xlu0 %723 }
 0x2f5   : > { %1714 = vpow2.f32 %v555_v30 }
 0x302   : > { %v1715_v31 = vpop.eup %1714 }
 0x303   : > { %1571 = vmatmul.mubr.msk.f32.vlgmr.msra.gmra.mxu1 %vm475_vm2, %v1715_v31  ;;  %v557_v55 = vsel %vm475_vm2, %v1715_v31, 0.0 }
 0x304   : > { %1574 = vmatpush3.xpose.msk.msra.mxu1 %vm475_vm2, %v639_v13  ;;  %1575 = vmatprep.mubr.msk.f32.mxu1 %vm1972_vm0, %v1971_v0 }
 0x305   : > { %1578 = vmatprep.subr.mxu1 %v1971_v0 }
 0x307   : > { %1576 = vmatmul.mubr.msk.f32.vlgmr.msra.gmra.mxu1 %vm475_vm2, %v637_v14 }
 0x308   : > { %1579 = vmatpush3.msra.mxu1 %v724_v32  ;;  %1580 = vmatprep.mubr.msk.f32.mxu1 %vm1972_vm0, %v1971_v0 }
 0x309   : > { %1588 = vmatprep.subr.mxu1 %v1971_v0 }
 0x325   : > { %v887_v38 = vpop.xlane.xlu0 %886 }
 0x326   : > { %v888_v39 = vsub.f32 %v881_v22, %v887_v38 }
 0x328   : > { %v889_v40 = vmul.f32 1.442695, %v888_v39 }
 0x329   : > { %v1058_v43 = vpop.xlane.xlu0 %1057 }
 0x32a   : > { %1716 = vpow2.f32 %v889_v40  ;;  %v1059_v44 = vsub.f32 %v1052_v24, %v1058_v43 }
 0x32c   : > { %v1060_v47 = vmul.f32 1.442695, %v1059_v44 }
 0x32d   : > { %v1066_v53 = vpop.permute.xlu0 %1065 }
 0x337   : > { %v1717_v41 = vpop.eup %1716 }
 0x338   : > { %v891_v42 = vsel %vm475_vm2, %v1717_v41, 0.0 }
 0x3c3   : > { %v629_v33 = vpop.f32.mrf.mxu1 }
 0x3c5   : > { %v1572_v34 = vpop.f32.mrf.mxu1 }
 0x3c7   : > { %v710_v35 = vpop.f32.mrf.mxu1 }
 0x3c8   : > { %v714_v36 = vsel %vm475_vm2, %v710_v35, -inf }
 0x3c9   : > { %715 = vmax.xlane.f32.xlu1 %v714_v36  ;;  %v1577_v37 = vpop.f32.mrf.mxu1 }
 0x3da   : > { %894 = vrot.lane.b32.xlu1 %v2187_v8, %s1983_s13 }
 0x3fe   : > { %892 = vadd.xlane.f32.xlu1 %v891_v42 }
 0x452   : > { %v716_v45 = vpop.xlane.xlu1 %715 }
 0x453   : > { %v717_v46 = vsub.f32 %v710_v35, %v716_v45 }
 0x455   : > { %v718_v48 = vmul.f32 1.442695, %v717_v46 }
 0x456   : > { %v895_v50 = vpop.permute.xlu1 %894 }
 0x457   : > { %1718 = vpow2.f32 %v718_v48 }
 0x458   : > { %1720 = vpow2.f32 %v1060_v47 }
 0x464   : > { %v1719_v49 = vpop.eup %1718 }
 0x465   : > { %1581 = vmatmul.mubr.msk.f32.vlgmr.msra.gmra.mxu1 %vm475_vm2, %v1719_v49  ;;  %v720_v51 = vsel %vm475_vm2, %v1719_v49, 0.0  ;;  %v1721_v52 = vpop.eup %1720 }
 0x466   : > { %1589 = vmatpush3.msra.mxu1 %v895_v50  ;;  %721 = vadd.xlane.f32.xlu0 %v720_v51  ;;  %v1062_v54 = vsel %vm475_vm2, %v1721_v52, 0.0 }
 0x467   : > { %1590 = vmatprep.mubr.msk.f32.mxu1 %vm1972_vm0, %v1971_v0  ;;  %1598 = vmatprep.subr.mxu1 %v1971_v0 }
 0x469   : > { %1591 = vmatmul.mubr.msk.f32.vlgmr.msra.gmra.mxu1 %vm475_vm2, %v1717_v41 }
 0x46a   : > { %1599 = vmatpush3.msra.mxu1 %v1066_v53  ;;  %1063 = vadd.xlane.f32.xlu0 %v1062_v54 }
 0x46b   : > { %1600 = vmatprep.mubr.msk.f32.mxu1 %vm1972_vm0, %v1971_v0 }
 0x46d   : > { %1601 = vmatmul.mubr.msk.f32.vlgmr.msra.gmra.mxu1 %vm475_vm2, %v1721_v52 }
 0x46e   : > { %558 = vadd.xlane.f32.xlu0 %v557_v55 }
 0x487   : > { %v893_v61 = vpop.xlane.xlu1 %892 }
 0x4ef   : > { %v722_v56 = vpop.xlane.xlu0 %721 }
 0x4f3   : > { %v1064_v57 = vpop.xlane.xlu0 %1063 }
 0x4f7   : > { %v559_v58 = vpop.xlane.xlu0 %558 }
 0x4f8   : > { %1722 = vrcp.f32 %v559_v58 }
 0x4f9   : > { %1724 = vrcp.f32 %v722_v56 }
 0x4fa   : > { %1726 = vrcp.f32 %v893_v61 }
 0x4fb   : > { %1728 = vrcp.f32 %v1064_v57 }
 0x505   : > { %v1723_v59 = vpop.eup %1722 }
 0x506   : > { %v634_v60 = vmul.f32 %v1723_v59, %v629_v33  ;;  %v1725_v1 = vpop.eup %1724 }
 0x507   : > { %v1727_v7 = vpop.eup %1726 }
 0x508   : > { %635 = vst.msk [vmem:[#allocation2] sm:$0xff] %vm475_vm2, %v634_v60  ;;  %v1729_v11 = vpop.eup %1728 }
 0x525   : > { %v795_v2 = vpop.f32.mrf.mxu1 }
 0x526   : > { %v800_v4 = vmul.f32 %v1725_v1, %v795_v2 }
 0x527   : > { %v1582_v5 = vpop.f32.mrf.mxu1 }
 0x528   : > { %802 = vrot.lane.b32.xlu0 %v800_v4, %s1984_s24 }
 0x529   : > { %v966_v8 = vpop.f32.mrf.mxu1 }
 0x52a   : > { %v971_v9 = vmul.f32 %v1727_v7, %v966_v8 }
 0x52b   : > { %v1592_v10 = vpop.f32.mrf.mxu1 }
 0x52c   : > { %973 = vrot.lane.b32.xlu1 %v971_v9, %s1985_s26  ;;  %s2277_s26 = scalar_lea.hbm %s2400_s5, %s2263_s21 }
 0x52d   : > { %v1137_v12 = vpop.f32.mrf.mxu1 }
 0x52e   : > { %v1142_v13 = vmul.f32 %v1729_v11, %v1137_v12 }
 0x52f   : > { %v1602_v14 = vpop.f32.mrf.mxu1 }
 0x530   : > { %1144 = vrot.lane.b32.xlu0 %v1142_v13, %s1986_s15  ;;  %s1810_s15 = scalar_lea.vmem %s1278_s11, 128 }
 0x531   : > { %p1811_p11 = scmp.ne.s32.totalorder %s1278_s11, %s1810_s15  ;;  %p1818_p12 = scmp.lt.s32.totalorder %s1816_s25, %s1810_s15 }
 0x533   : > { %p1812_p1 = pnand %p1811_p11, %p2428_p0  ;;  %p1819_p7 = por %p1818_p12, %p1817_p6 }
 0x535   : > { %p1813_p2 = pneg %p1812_p1 }
 0x537   : > { %p1820_p9 = pnand %p1819_p7, %p1813_p2 }
 0x59a   : > { %v803_v15 = vpop.permute.xlu0 %802 }
 0x59b   : > { %806 = vst.msk [vmem:[#allocation2] sm:$0xff] %vm805_vm3, %v803_v15 }
 0x59e   : > { %v974_v0 = vpop.permute.xlu1 %973 }
 0x59f   : > { %977 = vst.msk [vmem:[#allocation2] sm:$0xff] %vm976_vm4, %v974_v0 }
 0x5a2   : > { %v1145_v16 = vpop.permute.xlu0 %1144 }
 0x5a3   : > { %1148 = vst.msk [vmem:[#allocation2] sm:$0xff] %vm1147_vm5, %v1145_v16 }
 0x5aa   : > { %v1149_v17 = vld [vmem:[#allocation2] sm:$0xff] }
 0x5ab   : > { %1612 = vmatmul.mubr.msk.f32.vlgmr.msra.gmra.mxu0 %vm390_vm1, %v1149_v17 }
 0x5ac   : > { %1823 = shalt.err (!%p1820_p9)
}
 0x5ad   : > { %s1824_s3 = scalar_lea.hbm %s2269_s19, 128  ;;  %s1828_s24 = scalar_lea.hbm %s2401_s6, 256 }
 0x5ae   : > { %p1825_p13 = scmp.ne.s32.totalorder %s2269_s19, %s1824_s3  ;;  %p1829_p4 = scmp.lt.s32.totalorder %s2269_s19, %s2401_s6 }
 0x5af   : > { %p1830_p8 = scmp.lt.s32.totalorder %s1828_s24, %s1824_s3 }
 0x5b0   : > { %p1826_p5 = pnand %p1825_p13, %p2428_p0 }
 0x5b1   : > { %p1831_p3 = por %p1830_p8, %p1829_p4 }
 0x5b2   : > { %p1827_p10 = pneg %p1826_p5 }
 0x5b4   : > { %p1832_p11 = pnand %p1831_p3, %p1827_p10 }
 0x5b6   : > { %1835 = shalt.err (!%p1832_p11)
}
 0x5b7   : > { %1625 = dma.vmem_to_hbm [thread:$0]  (%p2428_p0), %s1278_s11, 128, %s2269_s19, %s2279_s22  }
 0x5b8   : > { %s2429_s15 = scalar_lea.vmem [#allocation9], %s2159_s10  ;;  %s2304_s16 = scalar_lea.hbm %s2402_s7, %s2263_s21 }
 0x5b9   : > { %s1264_s23 = sshll.u32 %s2429_s15, 4  ;;  %s1236_s3 = scalar_lea.sflag [#allocation5], %s2156_s1  ;;  %s1265_s23 = int_to_ptr.vmem [resolvable:$true] %s1264_s23 }
 0x5ba   : > { %s1836_s13 = scalar_lea.vmem %s1265_s23, 128  ;;  %s1988_s24 = smov [#allocation9]  }
 0x5bb   : > { %p1837_p1 = scmp.ne.s32.totalorder %s1265_s23, %s1836_s13  ;;  %s1840_s9 = sshll.u32 %s1988_s24, 4  ;;  %s1841_s9 = int_to_ptr.vmem [resolvable:$false] %s1840_s9 }
 0x5bc   : > { %s1842_s19 = scalar_lea.vmem %s1841_s9, 256  ;;  %p1843_p12 = scmp.lt.s32.totalorder %s1265_s23, %s1841_s9 }
 0x5bd   : > { %p1838_p2 = pnand %p1837_p1, %p2428_p0  ;;  %p1844_p7 = scmp.lt.s32.totalorder %s1842_s19, %s1836_s13 }
 0x5bf   : > { %p1839_p6 = pneg %p1838_p2  ;;  %p1845_p9 = por %p1844_p7, %p1843_p12 }
 0x5c1   : > { %p1846_p13 = pnand %p1845_p9, %p1839_p6 }
 0x5c3   : > { %1849 = shalt.err (!%p1846_p13)
}
 0x5c4   : > { %s1850_s11 = scalar_lea.hbm %s2277_s26, 128  ;;  %s1854_s20 = scalar_lea.hbm %s2400_s5, 256 }
 0x5c5   : > { %p1851_p5 = scmp.ne.s32.totalorder %s2277_s26, %s1850_s11  ;;  %p1855_p8 = scmp.lt.s32.totalorder %s2277_s26, %s2400_s5 }
 0x5c6   : > { %p1856_p3 = scmp.lt.s32.totalorder %s1854_s20, %s1850_s11 }
 0x5c7   : > { %p1852_p10 = pnand %p1851_p5, %p2428_p0 }
 0x5c8   : > { %p1857_p11 = por %p1856_p3, %p1855_p8 }
 0x5c9   : > { %p1853_p4 = pneg %p1852_p10 }
 0x5cb   : > { %p1858_p1 = pnand %p1857_p11, %p1853_p4 }
 0x5cd   : > { %1861 = shalt.err (!%p1858_p1)
}
 0x5ce   : > { %1624 = dma.vmem_to_hbm [thread:$0]  (%p2428_p0), %s1265_s23, 128, %s2277_s26, %s1236_s3  }
 0x5cf   : > { %s1862_s13 = scalar_lea.vmem %s2307_s18, 128  ;;  %s1989_s9 = smov [#allocation12]  }
 0x5d0   : > { %p1863_p2 = scmp.ne.s32.totalorder %s2307_s18, %s1862_s13  ;;  %s1866_s0 = sshll.u32 %s1989_s9, 4  ;;  %s1867_s0 = int_to_ptr.vmem [resolvable:$false] %s1866_s0 }
 0x5d1   : > { %s1868_s19 = scalar_lea.vmem %s1867_s0, 256  ;;  %p1869_p7 = scmp.lt.s32.totalorder %s2307_s18, %s1867_s0 }
 0x5d2   : > { %p1864_p6 = pnand %p1863_p2, %p2428_p0  ;;  %p1870_p9 = scmp.lt.s32.totalorder %s1868_s19, %s1862_s13 }
 0x5d4   : > { %p1865_p12 = pneg %p1864_p6  ;;  %p1871_p13 = por %p1870_p9, %p1869_p7 }
 0x5d6   : > { %p1872_p5 = pnand %p1871_p13, %p1865_p12 }
 0x5d8   : > { %1875 = shalt.err (!%p1872_p5)
}
 0x5d9   : > { %s1876_s11 = scalar_lea.hbm %s2304_s16, 128  ;;  %s1880_s3 = scalar_lea.hbm %s2402_s7, 256 }
 0x5da   : > { %p1877_p10 = scmp.ne.s32.totalorder %s2304_s16, %s1876_s11  ;;  %p1881_p3 = scmp.lt.s32.totalorder %s2304_s16, %s2402_s7 }
 0x5db   : > { %p1882_p11 = scmp.lt.s32.totalorder %s1880_s3, %s1876_s11 }
 0x5dc   : > { %p1878_p4 = pnand %p1877_p10, %p2428_p0 }
 0x5dd   : > { %p1883_p1 = por %p1882_p11, %p1881_p3 }
 0x5de   : > { %p1879_p8 = pneg %p1878_p4 }
 0x5e0   : > { %p1884_p2 = pnand %p1883_p1, %p1879_p8 }
 0x5e2   : > { %1887 = shalt.err (!%p1884_p2)
}
 0x5e3   : > { %1626 = dma.vmem_to_hbm [thread:$0]  (%p2428_p0), %s2307_s18, 128, %s2304_s16, %s2279_s22   ;;  %v1514_v18 = vld [vmem:[%s2399_s4] ss:$0 sm:$0xff] }
 0x5e4   : > { %s377_s13 = scalar_lea.vmem [#allocation13], %s2159_s10  ;;  %s2355_s11 = scalar_lea.hbm %s2403_s8, %s2263_s21 }
 0x5e5   : > { %s1303_s9 = sshll.u32 %s377_s13, 4  ;;  %s1251_s26 = scalar_lea.sflag [#allocation14], %s2156_s1  ;;  %s1304_s9 = int_to_ptr.vmem [resolvable:$true] %s1303_s9 }
 0x5e6   : > { %s1888_s23 = scalar_lea.vmem %s1304_s9, 128  ;;  %s1990_s18 = smov [#allocation13]  }
 0x5e7   : > { %p1889_p6 = scmp.ne.s32.totalorder %s1304_s9, %s1888_s23  ;;  %s1892_s10 = sshll.u32 %s1990_s18, 4  ;;  %s1893_s10 = int_to_ptr.vmem [resolvable:$false] %s1892_s10 }
 0x5e8   : > { %s1894_s22 = scalar_lea.vmem %s1893_s10, 256  ;;  %p1895_p9 = scmp.lt.s32.totalorder %s1304_s9, %s1893_s10 }
 0x5e9   : > { %p1890_p12 = pnand %p1889_p6, %p2428_p0  ;;  %p1896_p13 = scmp.lt.s32.totalorder %s1894_s22, %s1888_s23 }
 0x5eb   : > { %p1891_p7 = pneg %p1890_p12  ;;  %p1897_p5 = por %p1896_p13, %p1895_p9 }
 0x5ed   : > { %p1898_p10 = pnand %p1897_p5, %p1891_p7 }
 0x66b   : > { %v1230_v19 = vpop.f32.mrf.mxu0 }
 0x66c   : > { %v1231_v20 = vadd.f32 %v1514_v18, %v1230_v19 }
 0x66d   : > { %v1613_v21 = vpop.f32.mrf.mxu0 }
 0x66e   : > { %1234 = vst.msk [vmem:[%s377_s13] sm:$0xff] %vm390_vm1, %v1231_v20 }
 0x66f   : > { %1901 = shalt.err (!%p1898_p10)
}
 0x670   : > { %s1902_s21 = scalar_lea.hbm %s2355_s11, 128  ;;  %s1906_s3 = scalar_lea.hbm %s2403_s8, 256 }
 0x671   : > { %p1903_p4 = scmp.ne.s32.totalorder %s2355_s11, %s1902_s21  ;;  %p1907_p11 = scmp.lt.s32.totalorder %s2355_s11, %s2403_s8 }
 0x672   : > { %p1908_p1 = scmp.lt.s32.totalorder %s1906_s3, %s1902_s21 }
 0x673   : > { %p1904_p8 = pnand %p1903_p4, %p2428_p0 }
 0x674   : > { %p1909_p2 = por %p1908_p1, %p1907_p11 }
 0x675   : > { %p1905_p3 = pneg %p1904_p8 }
 0x677   : > { %p1910_p6 = pnand %p1909_p2, %p1905_p3 }
 0x679   : > { %1913 = shalt.err (!%p1910_p6)
}
 0x67a   : > { %1627 = dma.vmem_to_hbm [thread:$0]  (%p2428_p0), %s1304_s9, 128, %s2355_s11, %s1251_s26  }
 0x67b PF: > { %s1315_s20 = sand.u32 1, %s1952_s27   ;;  %p2430_p12 = scmp.ne.s32.totalorder %s2414_s12, 0 }
 0x67c   : > { %p2431_p7 = scmp.ge.s32.totalorder %s1964_s30, 2  ;;  %s1316_s24 = scalar_lea.sflag [#allocation5], %s1315_s20 }
 0x67e   : > { %p1644_p9 = pnand %p2431_p7, %p2430_p12 }
 0x680   : > { %p1645_p13 = pneg %p1644_p9 }
 0x682   : > { %1939 = dma.done.wait (%p1645_p13), %s1316_s24, 128  }
 0x683   : > { %1941 = vsyncadd (%p1645_p13), %s1316_s24, 4294967168  ;;  %s2432_s13 = sadd.s32 4294967294, %s1964_s30  }
 0x684   : > { %s1324_s0 = sand.u32 1, %s2432_s13  }
 0x685   : > { %s1325_s19 = scalar_lea.sflag [#allocation11], %s1324_s0 }
 0x686   : > { %1943 = dma.done.wait (%p1645_p13), %s1325_s19, 256  }
 0x687   : > { %1945 = vsyncadd (%p1645_p13), %s1325_s19, 4294967040  ;;  %s1343_s17 = scalar_lea.sflag [#allocation14], %s1315_s20 }
 0x688   : > { %1947 = dma.done.wait (%p1645_p13), %s1343_s17, 128  }
 0x689   : > { %1949 = vsyncadd (%p1645_p13), %s1343_s17, 4294967168  ;;  %s2433_s9 = sld [smem:[#allocation20_spill]]  ;;  %p29_p0 = scmp.ge.s32.totalorder %s2110_s14, 4  }
 0x68a   : > { %s2434_s27 = smov %s1956_s28  ;;  %s2435_s28 = smov %s1960_s29 }
 0x68b   : > { %s2437_s30 = smov %s2110_s14  ;;  %31 = sbr.rel (!%p29_p0) target bundleno = 14 (0xe), region = 142 }
 0x68f   : > { %s2436_s29 = smov %s2433_s9 }
 0x690   :  { %1348 = vsyncpa [#allocation4], 1 }
 0x691   :  { %1350 = vsyncpa [#allocation4 + $0x1], 1 }
 0x692   :  { %1351 = vsyncpa [#allocation7], 1 }
 0x693   :  { %1352 = vsyncpa [#allocation5], 1 }
 0x694   :  { %1354 = vsyncpa [#allocation5 + $0x1], 1 }
 0x695   :  { %1355 = vsyncpa [#allocation11], 1 }
 0x696   :  { %1357 = vsyncpa [#allocation11 + $0x1], 1 }
 0x697   :  { %1358 = vsyncpa [#allocation14], 1 }
 0x698   :  { %1360 = vsyncpa [#allocation14 + $0x1], 1 }

</bundles_post_ra>
